<compile_context>
chip_gen: v7x
topology: tpu7x:2x2x1
jax: 0.10.0
libtpu: 0.0.40
codegen_flags: <defaults>
</compile_context>

<pallas_src>
import functools

import jax
import jax.numpy as jnp
from jax import lax
from jax.experimental import pallas as pl
from jax.experimental.pallas import tpu as pltpu


def _round_up(x: int, m: int) -> int:
    return (x + m - 1) // m * m


def _chip_info():
    """Returns (two_tensorcores_per_chip, small_vmem) for the local device.

    Conservative fallback: single TensorCore, small (v7x-sized) VMEM budget.
    """
    two_tc = False
    small_vmem = True
    try:
        kind = jax.devices()[0].device_kind.lower()
        small_vmem = ("v7" in kind) or ("7x" in kind)          # v7x: 64 MiB/TC
        two_tc = any(t in kind for t in ("v4", "v5p", "v7", "7x"))
    except Exception:
        pass
    return two_tc, small_vmem


def rnn_fc_kernel(x_ref, wih_ref, whh_ref, b_ref, wfc_ref, bfc_ref,
                  out_ref, h_ref, pre_ref, *, seq_len, needs_mask, unroll):
    """One (batch-shard, time-chunk) grid step of the RNN + final Linear.

    x_ref   : (t_chunk, b_blk, E_pad)      bf16  streamed activation chunk
    wih_ref : (E_pad, H_pad)               bf16  W_ih^T (zero padded)
    whh_ref : (H_pad, H_pad)               bf16  W_hh^T (zero padded)
    b_ref   : (1, H_pad)                   f32   b_ih + b_hh (zero padded)
    wfc_ref : (H_pad, O_pad)               f32   W_fc^T (zero padded)
    bfc_ref : (1, O_pad)                   f32
    out_ref : (b_blk, O_pad)               f32   written on last time-chunk
    h_ref   : (b_blk, H_pad)               f32   hidden-state scratch (persists)
    pre_ref : (t_chunk*b_blk, H_pad)       f32   hoisted input-projection scratch
    """
    t_idx = pl.program_id(1)
    last_t = pl.num_programs(1) - 1
    t_chunk, b_blk, e_pad = x_ref.shape

    # Initialise the hidden state at the start of every batch shard.
    @pl.when(t_idx == 0)
    def _():
        h_ref[...] = jnp.zeros_like(h_ref)

    # Hoisted input projection for the whole chunk: one big (t_chunk*b_blk, E)
    # @ (E, H) bf16 MXU matmul with f32 accumulation + combined bias, stored
    # 2-D so the serial loop reads aligned sublane slices.
    # TODO(synk): software-pipeline this projection one chunk ahead (2-slot
    # pre scratch + lagged consumption) so MXU work overlaps the tanh chain.
    x2d = x_ref[...].reshape(t_chunk * b_blk, e_pad)
    pre_ref[...] = (jnp.dot(x2d, wih_ref[...],
                            preferred_element_type=jnp.float32) + b_ref[...])

    whh = whh_ref[...]  # bf16, resident for the whole chunk
    # TODO(synk): hold W_hh in the MXU staging registers across the chunk via
    # pltpu.matmul_push_rhs / matmul_acc_lhs instead of a full dot per step.

    def run_chunk(apply_mask):
        def step(t, h):
            pre_t = pre_ref[pl.ds(pl.multiple_of(t * b_blk, 8), b_blk), :]
            rec = jnp.dot(h.astype(jnp.bfloat16), whh,
                          preferred_element_type=jnp.float32)
            h_new = jnp.tanh(pre_t + rec)
            if apply_mask:  # only emitted on the (padded) last time chunk
                valid = (t_idx * t_chunk + t) < seq_len
                h_new = jnp.where(valid, h_new, h)
            return h_new

        # Bounded unroll (factor <= 8) over the chunk.
        h_ref[...] = lax.fori_loop(0, t_chunk, step, h_ref[...], unroll=unroll)

    if needs_mask:
        # Sequence padding only lives in the last time chunk; keep the
        # compare+select off the latency-critical chain everywhere else.
        @pl.when(t_idx != last_t)
        def _():
            run_chunk(False)

        @pl.when(t_idx == last_t)
        def _():
            run_chunk(True)
    else:
        run_chunk(False)

    # Final Linear on the last time-chunk only.
    @pl.when(t_idx == last_t)
    def _():
        out_ref[...] = (jnp.dot(h_ref[...], wfc_ref[...],
                                preferred_element_type=jnp.float32)
                        + bfc_ref[...]).astype(out_ref.dtype)


@functools.partial(jax.jit, static_argnames=("output_dim",))
def rnn_model_forward(text, embed_table, w_ih, w_hh, b_ih, b_hh, w_fc, b_fc,
                      *, output_dim):
    """Forward pass equivalent to RNNModel(bidirectional=False).forward(text)."""
    S, B = text.shape
    V, E = embed_table.shape
    H = w_hh.shape[0]
    O = output_dim

    # Lane/sublane-dense padded shapes.
    E_pad = _round_up(E, 128)
    H_pad = _round_up(H, 128)
    O_pad = _round_up(O, 128)
    B_pad = _round_up(B, 8)

    two_tc, small_vmem = _chip_info()

    # Time chunking (grid "arbitrary" axis); bounded-unroll inner loop.
    t_chunk = min(S, 32)
    S_pad = _round_up(S, t_chunk)
    num_t = S_pad // t_chunk
    needs_mask = S_pad != S
    unroll = min(t_chunk, 8)

    # Shard the batch across TensorCores only on true 2-TC chips; on v5e/v6e a
    # second "parallel" shard just doubles the serial recurrence length.
    n_b_shards = 2 if (two_tc and B_pad % 16 == 0) else 1
    b_blk = B_pad // n_b_shards

    # Pad + cast the embedding table once and gather straight into the padded
    # bf16 layout the kernel streams (single HBM pass over the activations).
    # TODO(synk): fuse the gather into the kernel (token ids via scalar
    # prefetch, table resident in VMEM) so x never materializes in HBM.
    embed_p = jnp.zeros((V, E_pad), jnp.bfloat16)
    embed_p = embed_p.at[:, :E].set(embed_table.astype(jnp.bfloat16))
    text_p = jnp.zeros((S_pad, B_pad), text.dtype).at[:S, :B].set(text)
    x_p = jnp.take(embed_p, text_p, axis=0)          # (S_pad, B_pad, E_pad) bf16

    # Matmul operands in bf16 (f32 accumulation); bias / tanh / h carry in f32.
    wih_p = jnp.zeros((E_pad, H_pad), jnp.bfloat16).at[:E, :H].set(
        w_ih.T.astype(jnp.bfloat16))
    whh_p = jnp.zeros((H_pad, H_pad), jnp.bfloat16).at[:H, :H].set(
        w_hh.T.astype(jnp.bfloat16))
    b_p = jnp.zeros((1, H_pad), jnp.float32).at[0, :H].set(
        (b_ih + b_hh).astype(jnp.float32))
    wfc_p = jnp.zeros((H_pad, O_pad), jnp.float32).at[:H, :O].set(
        w_fc.T.astype(jnp.float32))
    bfc_p = jnp.zeros((1, O_pad), jnp.float32).at[0, :O].set(
        b_fc.astype(jnp.float32))

    kernel = functools.partial(rnn_fc_kernel, seq_len=S,
                               needs_mask=needs_mask, unroll=unroll)

    # Chip-aware VMEM budget: headroom under v7x's 64 MiB, 100 MiB on v5e/v6e.
    vmem_limit = (48 if small_vmem else 100) * 1024 * 1024

    out_padded = pl.pallas_call(
        kernel,
        out_shape=jax.ShapeDtypeStruct((B_pad, O_pad), jnp.float32),
        grid_spec=pltpu.PrefetchScalarGridSpec(
            num_scalar_prefetch=0,
            grid=(n_b_shards, num_t),
            in_specs=[
                # streamed activation chunk (double-buffered by BlockSpec)
                pl.BlockSpec((t_chunk, b_blk, E_pad), lambda b, t: (t, b, 0)),
                # weights / biases: resident, same block every grid step
                pl.BlockSpec((E_pad, H_pad), lambda b, t: (0, 0)),
                pl.BlockSpec((H_pad, H_pad), lambda b, t: (0, 0)),
                pl.BlockSpec((1, H_pad), lambda b, t: (0, 0)),
                pl.BlockSpec((H_pad, O_pad), lambda b, t: (0, 0)),
                pl.BlockSpec((1, O_pad), lambda b, t: (0, 0)),
            ],
            out_specs=pl.BlockSpec((b_blk, O_pad), lambda b, t: (b, 0)),
            scratch_shapes=[
                pltpu.VMEM((b_blk, H_pad), jnp.float32),             # h
                pltpu.VMEM((t_chunk * b_blk, H_pad), jnp.float32),   # pre-acts
            ],
        ),
        compiler_params=pltpu.CompilerParams(
            dimension_semantics=("parallel", "arbitrary"),
            vmem_limit_bytes=vmem_limit,
        ),
    )(x_p, wih_p, whh_p, b_p, wfc_p, bfc_p)

    return out_padded[:B, :O]


def reference_forward(text, embed_table, w_ih, w_hh, b_ih, b_hh, w_fc, b_fc,
                      *, match_kernel_numerics=False):
    """Pure-JAX reference mirroring PyTorch semantics.

    With match_kernel_numerics=True both the input projection and the
    recurrent matmul quantise operands to bf16 (f32 accumulation), matching
    the kernel's numerics for a tight check.
    """
    x = jnp.take(embed_table, text, axis=0).astype(jnp.float32)   # (S, B, E)
    S, B, _ = x.shape
    H = w_hh.shape[0]
    bias = (b_ih + b_hh).astype(jnp.float32)
    if match_kernel_numerics:
        pre_in = jnp.dot(x.astype(jnp.bfloat16), w_ih.T.astype(jnp.bfloat16),
                         preferred_element_type=jnp.float32) + bias
        whh_t_bf = w_hh.T.astype(jnp.bfloat16)

        def rec(h):
            return jnp.dot(h.astype(jnp.bfloat16), whh_t_bf,
                           preferred_element_type=jnp.float32)
    else:
        pre_in = jnp.dot(x, w_ih.T.astype(jnp.float32)) + bias
        whh_t = w_hh.T.astype(jnp.float32)

        def rec(h):
            return h @ whh_t

    h = jnp.zeros((B, H), jnp.float32)
    for t in range(S):
        h = jnp.tanh(pre_in[t] + rec(h))
    # output.permute(1,0,2)[:, -1, :] == h at last timestep
    return h @ w_fc.T.astype(jnp.float32) + b_fc.astype(jnp.float32)


if __name__ == "__main__":
    # Small, module-consistent shapes.
    vocab_size = 50
    embed_dim = 16
    hidden_dim = 32
    output_dim = 8
    seq_len = 8
    batch = 2

    key = jax.random.PRNGKey(0)
    keys = jax.random.split(key, 8)

    # Deterministic parameter init (PyTorch-style uniform ranges).
    embed_table = jax.random.normal(keys[0], (vocab_size, embed_dim), jnp.float32)
    k = 1.0 / jnp.sqrt(hidden_dim)
    w_ih = jax.random.uniform(keys[1], (hidden_dim, embed_dim), jnp.float32, -k, k)
    w_hh = jax.random.uniform(keys[2], (hidden_dim, hidden_dim), jnp.float32, -k, k)
    b_ih = jax.random.uniform(keys[3], (hidden_dim,), jnp.float32, -k, k)
    b_hh = jax.random.uniform(keys[4], (hidden_dim,), jnp.float32, -k, k)
    kf = 1.0 / jnp.sqrt(hidden_dim)
    w_fc = jax.random.uniform(keys[5], (output_dim, hidden_dim), jnp.float32, -kf, kf)
    b_fc = jax.random.uniform(keys[6], (output_dim,), jnp.float32, -kf, kf)

    text = jax.random.randint(keys[7], (seq_len, batch), 0, vocab_size, jnp.int32)

    out = rnn_model_forward(text, embed_table, w_ih, w_hh, b_ih, b_hh,
                            w_fc, b_fc, output_dim=output_dim)
    out = jax.block_until_ready(out)
    assert out.shape == (batch, output_dim)

    # Tight check against a numerics-matched (bf16 matmul operands) reference.
    ref_matched = reference_forward(text, embed_table, w_ih, w_hh, b_ih, b_hh,
                                    w_fc, b_fc, match_kernel_numerics=True)
    assert jnp.allclose(out, ref_matched, atol=2e-3, rtol=2e-3), (out, ref_matched)

    # Loose semantic check against the pure-f32 PyTorch-equivalent reference
    # (bf16 matmul operands introduce ~1e-2-level differences).
    ref_f32 = reference_forward(text, embed_table, w_ih, w_hh, b_ih, b_hh,
                                w_fc, b_fc, match_kernel_numerics=False)
    assert jnp.allclose(out, ref_f32, atol=5e-2, rtol=5e-2), (out, ref_f32)

    print("KERNEL_OK")
</pallas_src>

<mosaic_0001>
module attributes {stable_mosaic.version = 11 : i64} {
  func.func @rnn_fc_kernel(%arg0: i32, %arg1: i32, %arg2: memref<8x8x128xbf16, #tpu.memory_space<vmem>>, %arg3: memref<128x128xbf16, #tpu.memory_space<vmem>>, %arg4: memref<128x128xbf16, #tpu.memory_space<vmem>>, %arg5: memref<1x128xf32, #tpu.memory_space<vmem>>, %arg6: memref<128x128xf32, #tpu.memory_space<vmem>>, %arg7: memref<1x128xf32, #tpu.memory_space<vmem>>, %arg8: memref<8x128xf32, #tpu.memory_space<vmem>>, %arg9: memref<8x128xf32, #tpu.memory_space<vmem>>, %arg10: memref<64x128xf32, #tpu.memory_space<vmem>>) attributes {dimension_semantics = [#tpu.dimension_semantics<parallel>, #tpu.dimension_semantics<arbitrary>], iteration_bounds = array<i64: 1, 1>, scalar_prefetch = 0 : i64, scratch_operands = 2 : i64, tpu.core_type = #tpu.core_type<tc>, window_params = [{transform_indices = @transform_0, window_bounds = array<i64: 8, 8, 128>}, {pipeline_mode = #tpu.pipeline_mode<synchronous>, transform_indices = @transform_1, window_bounds = array<i64: 128, 128>}, {pipeline_mode = #tpu.pipeline_mode<synchronous>, transform_indices = @transform_2, window_bounds = array<i64: 128, 128>}, {pipeline_mode = #tpu.pipeline_mode<synchronous>, transform_indices = @transform_3, window_bounds = array<i64: 1, 128>}, {pipeline_mode = #tpu.pipeline_mode<synchronous>, transform_indices = @transform_4, window_bounds = array<i64: 128, 128>}, {pipeline_mode = #tpu.pipeline_mode<synchronous>, transform_indices = @transform_5, window_bounds = array<i64: 1, 128>}, {transform_indices = @transform_6, window_bounds = array<i64: 8, 128>}]} {
    %c0_i32 = arith.constant 0 : i32
    %0 = arith.cmpi eq, %arg1, %c0_i32 : i32
    %1 = arith.extui %0 : i1 to i32
    %c0_i32_0 = arith.constant 0 : i32
    %2 = arith.cmpi ne, %1, %c0_i32_0 : i32
    scf.if %2 {
      %cst_42 = arith.constant 0.000000e+00 : f32
      %81 = vector.broadcast %cst_42 : f32 to vector<8x128xf32>
      %c0_43 = arith.constant 0 : index
      %c0_44 = arith.constant 0 : index
      %82 = vector.load %arg9[%c0_43, %c0_44] : memref<8x128xf32, #tpu.memory_space<vmem>>, vector<8x128xf32>
      tpu.vector_store %arg9[%c0_43, %c0_44], %81 {strides = array<i32>} : memref<8x128xf32, #tpu.memory_space<vmem>>, vector<8x128xf32>,
    } else {
    }
    %c0 = arith.constant 0 : index
    %c0_1 = arith.constant 0 : index
    %c0_2 = arith.constant 0 : index
    %3 = vector.load %arg2[%c0, %c0_1, %c0_2] : memref<8x8x128xbf16, #tpu.memory_space<vmem>>, vector<8x8x128xbf16>
    %4 = vector.shape_cast %3 : vector<8x8x128xbf16> to vector<64x128xbf16>
    %c0_3 = arith.constant 0 : index
    %c0_4 = arith.constant 0 : index
    %5 = vector.load %arg3[%c0_3, %c0_4] : memref<128x128xbf16, #tpu.memory_space<vmem>>, vector<128x128xbf16>
    %cst = arith.constant dense<0.000000e+00> : vector<64x128xf32>
    %6 = tpu.matmul %4, %5, %cst {dimension_numbers = #tpu.dot_dimension_numbers<[1], [0], [0], [1], [0, 0, 1, 1], [], []>} : vector<64x128xbf16>, vector<128x128xbf16>, vector<64x128xf32> -> vector<64x128xf32>
    %c0_5 = arith.constant 0 : index
    %c0_6 = arith.constant 0 : index
    %7 = vector.load %arg5[%c0_5, %c0_6] : memref<1x128xf32, #tpu.memory_space<vmem>>, vector<1x128xf32>
    %8 = vector.broadcast %7 : vector<1x128xf32> to vector<64x128xf32>
    %9 = arith.addf %6, %8 : vector<64x128xf32>
    %c0_7 = arith.constant 0 : index
    %c0_8 = arith.constant 0 : index
    %10 = vector.load %arg10[%c0_7, %c0_8] : memref<64x128xf32, #tpu.memory_space<vmem>>, vector<64x128xf32>
    tpu.vector_store %arg10[%c0_7, %c0_8], %9 {strides = array<i32>} : memref<64x128xf32, #tpu.memory_space<vmem>>, vector<64x128xf32>,
    %c0_9 = arith.constant 0 : index
    %c0_10 = arith.constant 0 : index
    %11 = vector.load %arg4[%c0_9, %c0_10] : memref<128x128xbf16, #tpu.memory_space<vmem>>, vector<128x128xbf16>
    %c0_11 = arith.constant 0 : index
    %c0_12 = arith.constant 0 : index
    %12 = vector.load %arg9[%c0_11, %c0_12] : memref<8x128xf32, #tpu.memory_space<vmem>>, vector<8x128xf32>
    %c0_i32_13 = arith.constant 0 : i32
    %c8_i32 = arith.constant 8 : i32
    %13 = arith.muli %c0_i32_13, %c8_i32 : i32
    %14 = tpu.assume_multiple %13, 8 : i32
    %15 = arith.index_cast %14 : i32 to index
    %c0_14 = arith.constant 0 : index
    %16 = vector.load %arg10[%15, %c0_14] : memref<64x128xf32, #tpu.memory_space<vmem>>, vector<8x128xf32>
    %17 = arith.truncf %12 : vector<8x128xf32> to vector<8x128xbf16>
    %cst_15 = arith.constant dense<0.000000e+00> : vector<8x128xf32>
    %18 = tpu.matmul %17, %11, %cst_15 {dimension_numbers = #tpu.dot_dimension_numbers<[1], [0], [0], [1], [0, 0, 1, 1], [], []>} : vector<8x128xbf16>, vector<128x128xbf16>, vector<8x128xf32> -> vector<8x128xf32>
    %19 = arith.addf %16, %18 : vector<8x128xf32>
    %20 = math.tanh %19 : vector<8x128xf32>
    %c1_i32 = arith.constant 1 : i32
    %c8_i32_16 = arith.constant 8 : i32
    %21 = arith.muli %c1_i32, %c8_i32_16 : i32
    %22 = tpu.assume_multiple %21, 8 : i32
    %23 = arith.index_cast %22 : i32 to index
    %c0_17 = arith.constant 0 : index
    %24 = vector.load %arg10[%23, %c0_17] : memref<64x128xf32, #tpu.memory_space<vmem>>, vector<8x128xf32>
    %25 = arith.truncf %20 : vector<8x128xf32> to vector<8x128xbf16>
    %cst_18 = arith.constant dense<0.000000e+00> : vector<8x128xf32>
    %26 = tpu.matmul %25, %11, %cst_18 {dimension_numbers = #tpu.dot_dimension_numbers<[1], [0], [0], [1], [0, 0, 1, 1], [], []>} : vector<8x128xbf16>, vector<128x128xbf16>, vector<8x128xf32> -> vector<8x128xf32>
    %27 = arith.addf %24, %26 : vector<8x128xf32>
    %28 = math.tanh %27 : vector<8x128xf32>
    %c2_i32 = arith.constant 2 : i32
    %c8_i32_19 = arith.constant 8 : i32
    %29 = arith.muli %c2_i32, %c8_i32_19 : i32
    %30 = tpu.assume_multiple %29, 8 : i32
    %31 = arith.index_cast %30 : i32 to index
    %c0_20 = arith.constant 0 : index
    %32 = vector.load %arg10[%31, %c0_20] : memref<64x128xf32, #tpu.memory_space<vmem>>, vector<8x128xf32>
    %33 = arith.truncf %28 : vector<8x128xf32> to vector<8x128xbf16>
    %cst_21 = arith.constant dense<0.000000e+00> : vector<8x128xf32>
    %34 = tpu.matmul %33, %11, %cst_21 {dimension_numbers = #tpu.dot_dimension_numbers<[1], [0], [0], [1], [0, 0, 1, 1], [], []>} : vector<8x128xbf16>, vector<128x128xbf16>, vector<8x128xf32> -> vector<8x128xf32>
    %35 = arith.addf %32, %34 : vector<8x128xf32>
    %36 = math.tanh %35 : vector<8x128xf32>
    %c3_i32 = arith.constant 3 : i32
    %c8_i32_22 = arith.constant 8 : i32
    %37 = arith.muli %c3_i32, %c8_i32_22 : i32
    %38 = tpu.assume_multiple %37, 8 : i32
    %39 = arith.index_cast %38 : i32 to index
    %c0_23 = arith.constant 0 : index
    %40 = vector.load %arg10[%39, %c0_23] : memref<64x128xf32, #tpu.memory_space<vmem>>, vector<8x128xf32>
    %41 = arith.truncf %36 : vector<8x128xf32> to vector<8x128xbf16>
    %cst_24 = arith.constant dense<0.000000e+00> : vector<8x128xf32>
    %42 = tpu.matmul %41, %11, %cst_24 {dimension_numbers = #tpu.dot_dimension_numbers<[1], [0], [0], [1], [0, 0, 1, 1], [], []>} : vector<8x128xbf16>, vector<128x128xbf16>, vector<8x128xf32> -> vector<8x128xf32>
    %43 = arith.addf %40, %42 : vector<8x128xf32>
    %44 = math.tanh %43 : vector<8x128xf32>
    %c4_i32 = arith.constant 4 : i32
    %c8_i32_25 = arith.constant 8 : i32
    %45 = arith.muli %c4_i32, %c8_i32_25 : i32
    %46 = tpu.assume_multiple %45, 8 : i32
    %47 = arith.index_cast %46 : i32 to index
    %c0_26 = arith.constant 0 : index
    %48 = vector.load %arg10[%47, %c0_26] : memref<64x128xf32, #tpu.memory_space<vmem>>, vector<8x128xf32>
    %49 = arith.truncf %44 : vector<8x128xf32> to vector<8x128xbf16>
    %cst_27 = arith.constant dense<0.000000e+00> : vector<8x128xf32>
    %50 = tpu.matmul %49, %11, %cst_27 {dimension_numbers = #tpu.dot_dimension_numbers<[1], [0], [0], [1], [0, 0, 1, 1], [], []>} : vector<8x128xbf16>, vector<128x128xbf16>, vector<8x128xf32> -> vector<8x128xf32>
    %51 = arith.addf %48, %50 : vector<8x128xf32>
    %52 = math.tanh %51 : vector<8x128xf32>
    %c5_i32 = arith.constant 5 : i32
    %c8_i32_28 = arith.constant 8 : i32
    %53 = arith.muli %c5_i32, %c8_i32_28 : i32
    %54 = tpu.assume_multiple %53, 8 : i32
    %55 = arith.index_cast %54 : i32 to index
    %c0_29 = arith.constant 0 : index
    %56 = vector.load %arg10[%55, %c0_29] : memref<64x128xf32, #tpu.memory_space<vmem>>, vector<8x128xf32>
    %57 = arith.truncf %52 : vector<8x128xf32> to vector<8x128xbf16>
    %cst_30 = arith.constant dense<0.000000e+00> : vector<8x128xf32>
    %58 = tpu.matmul %57, %11, %cst_30 {dimension_numbers = #tpu.dot_dimension_numbers<[1], [0], [0], [1], [0, 0, 1, 1], [], []>} : vector<8x128xbf16>, vector<128x128xbf16>, vector<8x128xf32> -> vector<8x128xf32>
    %59 = arith.addf %56, %58 : vector<8x128xf32>
    %60 = math.tanh %59 : vector<8x128xf32>
    %c6_i32 = arith.constant 6 : i32
    %c8_i32_31 = arith.constant 8 : i32
    %61 = arith.muli %c6_i32, %c8_i32_31 : i32
    %62 = tpu.assume_multiple %61, 8 : i32
    %63 = arith.index_cast %62 : i32 to index
    %c0_32 = arith.constant 0 : index
    %64 = vector.load %arg10[%63, %c0_32] : memref<64x128xf32, #tpu.memory_space<vmem>>, vector<8x128xf32>
    %65 = arith.truncf %60 : vector<8x128xf32> to vector<8x128xbf16>
    %cst_33 = arith.constant dense<0.000000e+00> : vector<8x128xf32>
    %66 = tpu.matmul %65, %11, %cst_33 {dimension_numbers = #tpu.dot_dimension_numbers<[1], [0], [0], [1], [0, 0, 1, 1], [], []>} : vector<8x128xbf16>, vector<128x128xbf16>, vector<8x128xf32> -> vector<8x128xf32>
    %67 = arith.addf %64, %66 : vector<8x128xf32>
    %68 = math.tanh %67 : vector<8x128xf32>
    %c7_i32 = arith.constant 7 : i32
    %c8_i32_34 = arith.constant 8 : i32
    %69 = arith.muli %c7_i32, %c8_i32_34 : i32
    %70 = tpu.assume_multiple %69, 8 : i32
    %71 = arith.index_cast %70 : i32 to index
    %c0_35 = arith.constant 0 : index
    %72 = vector.load %arg10[%71, %c0_35] : memref<64x128xf32, #tpu.memory_space<vmem>>, vector<8x128xf32>
    %73 = arith.truncf %68 : vector<8x128xf32> to vector<8x128xbf16>
    %cst_36 = arith.constant dense<0.000000e+00> : vector<8x128xf32>
    %74 = tpu.matmul %73, %11, %cst_36 {dimension_numbers = #tpu.dot_dimension_numbers<[1], [0], [0], [1], [0, 0, 1, 1], [], []>} : vector<8x128xbf16>, vector<128x128xbf16>, vector<8x128xf32> -> vector<8x128xf32>
    %75 = arith.addf %72, %74 : vector<8x128xf32>
    %76 = math.tanh %75 : vector<8x128xf32>
    %c8_i32_37 = arith.constant 8 : i32
    %c0_38 = arith.constant 0 : index
    %c0_39 = arith.constant 0 : index
    %77 = vector.load %arg9[%c0_38, %c0_39] : memref<8x128xf32, #tpu.memory_space<vmem>>, vector<8x128xf32>
    tpu.vector_store %arg9[%c0_38, %c0_39], %76 {strides = array<i32>} : memref<8x128xf32, #tpu.memory_space<vmem>>, vector<8x128xf32>,
    %c0_i32_40 = arith.constant 0 : i32
    %78 = arith.cmpi eq, %arg1, %c0_i32_40 : i32
    %79 = arith.extui %78 : i1 to i32
    %c0_i32_41 = arith.constant 0 : i32
    %80 = arith.cmpi ne, %79, %c0_i32_41 : i32
    scf.if %80 {
      %c0_42 = arith.constant 0 : index
      %c0_43 = arith.constant 0 : index
      %81 = vector.load %arg9[%c0_42, %c0_43] : memref<8x128xf32, #tpu.memory_space<vmem>>, vector<8x128xf32>
      %c0_44 = arith.constant 0 : index
      %c0_45 = arith.constant 0 : index
      %82 = vector.load %arg6[%c0_44, %c0_45] : memref<128x128xf32, #tpu.memory_space<vmem>>, vector<128x128xf32>
      %cst_46 = arith.constant dense<0.000000e+00> : vector<8x128xf32>
      %83 = tpu.matmul %81, %82, %cst_46 {dimension_numbers = #tpu.dot_dimension_numbers<[1], [0], [0], [1], [0, 0, 1, 1], [], []>} : vector<8x128xf32>, vector<128x128xf32>, vector<8x128xf32> -> vector<8x128xf32>
      %c0_47 = arith.constant 0 : index
      %c0_48 = arith.constant 0 : index
      %84 = vector.load %arg7[%c0_47, %c0_48] : memref<1x128xf32, #tpu.memory_space<vmem>>, vector<1x128xf32>
      %85 = vector.broadcast %84 : vector<1x128xf32> to vector<8x128xf32>
      %86 = arith.addf %83, %85 : vector<8x128xf32>
      %c0_49 = arith.constant 0 : index
      %c0_50 = arith.constant 0 : index
      %87 = vector.load %arg8[%c0_49, %c0_50] : memref<8x128xf32, #tpu.memory_space<vmem>>, vector<8x128xf32>
      tpu.vector_store %arg8[%c0_49, %c0_50], %86 {strides = array<i32>} : memref<8x128xf32, #tpu.memory_space<vmem>>, vector<8x128xf32>,
    } else {
    }
    return
  }
  func.func @transform_0(%arg0: i32, %arg1: i32) -> (i32, i32, i32) {
    %c0_i32 = arith.constant 0 : i32
    %c0_i32_0 = arith.constant 0 : i32
    return %arg1, %arg0, %c0_i32 : i32, i32, i32
  }
  func.func @transform_1(%arg0: i32, %arg1: i32) -> (i32, i32) {
    %c0_i32 = arith.constant 0 : i32
    %c0_i32_0 = arith.constant 0 : i32
    %c0_i32_1 = arith.constant 0 : i32
    return %c0_i32, %c0_i32_0 : i32, i32
  }
  func.func @transform_2(%arg0: i32, %arg1: i32) -> (i32, i32) {
    %c0_i32 = arith.constant 0 : i32
    %c0_i32_0 = arith.constant 0 : i32
    %c0_i32_1 = arith.constant 0 : i32
    return %c0_i32, %c0_i32_0 : i32, i32
  }
  func.func @transform_3(%arg0: i32, %arg1: i32) -> (i32, i32) {
    %c0_i32 = arith.constant 0 : i32
    %c0_i32_0 = arith.constant 0 : i32
    %c0_i32_1 = arith.constant 0 : i32
    return %c0_i32, %c0_i32_0 : i32, i32
  }
  func.func @transform_4(%arg0: i32, %arg1: i32) -> (i32, i32) {
    %c0_i32 = arith.constant 0 : i32
    %c0_i32_0 = arith.constant 0 : i32
    %c0_i32_1 = arith.constant 0 : i32
    return %c0_i32, %c0_i32_0 : i32, i32
  }
  func.func @transform_5(%arg0: i32, %arg1: i32) -> (i32, i32) {
    %c0_i32 = arith.constant 0 : i32
    %c0_i32_0 = arith.constant 0 : i32
    %c0_i32_1 = arith.constant 0 : i32
    return %c0_i32, %c0_i32_0 : i32, i32
  }
  func.func @transform_6(%arg0: i32, %arg1: i32) -> (i32, i32) {
    %c0_i32 = arith.constant 0 : i32
    %c0_i32_0 = arith.constant 0 : i32
    return %arg0, %c0_i32 : i32, i32
  }
}

</mosaic_0001>

<bundles_post_ra>
// kernel: rnn_model_forward.1
= control target key start
LH: loop header
LB: loop body
LE: loop exit
PB: predicated region body
PF: predicated region fallthrough
CT: control target
= control target key end

     0   :  { %11 = vsyncpa [#allocation5], 0  ;;  %s1758_s0 = inlined_call_operand.hbm [shape: bf16[8,8,128], index: 0, kind: input, shape index: {}]   ;;  %s1759_s1 = inlined_call_operand.hbm [shape: bf16[128,128], index: 1, kind: input, shape index: {}]   ;;  %s1760_s2 = inlined_call_operand.hbm [shape: bf16[128,128], index: 2, kind: input, shape index: {}]   ;;  %s1761_s3 = inlined_call_operand.hbm [shape: f32[1,128], index: 3, kind: input, shape index: {}]   ;;  %s1762_s4 = inlined_call_operand.hbm [shape: f32[128,128], index: 4, kind: input, shape index: {}]   ;;  %s1763_s5 = inlined_call_operand.hbm [shape: f32[1,128], index: 5, kind: input, shape index: {}]   ;;  %s1764_s6 = inlined_call_operand.hbm [shape: f32[8,128], index: 6, kind: output, shape index: {}]  }
   0x1   :  { %12 = vsyncpa [#allocation8], 0 }
   0x2   :  { %13 = vsyncpa [#allocation11], 0 }
   0x3   :  { %14 = vsyncpa [#allocation14], 0 }
   0x4   :  { %15 = vsyncpa [#allocation6], 0  ;;  %s1405_s21 = smov [#allocation7]   ;;  %s1406_s23 = smov [#allocation10]  }
   0x5   :  { %s33_s22 = sshll.u32 %s1405_s21, 4  ;;  %s58_s24 = sshll.u32 %s1406_s23, 4  ;;  %s34_s22 = int_to_ptr.vmem [resolvable:$true] %s33_s22  ;;  %s1454_s24 = int_to_ptr.vmem [resolvable:$true] %s58_s24 }
   0x6   :  { %s1241_s27 = scalar_lea.hbm %s1759_s1, 1024 }
   0x7   :  { %p1242_p0 = scmp.ne.s32.totalorder %s1759_s1, %s1241_s27  ;;  %p1245_p1 = scmp.lt.u32.totalorder %s1241_s27, %s1759_s1 }
   0x9   :  { %p1247_p2 = pnand %p1245_p1, %p1242_p0 }
   0xb   :  { %1250 = shalt.err (!%p1247_p2)
}
   0xc   :  { %s1251_s8 = scalar_lea.vmem %s34_s22, 1024  ;;  %p1256_p4 = scmp.lt.s32.totalorder %s34_s22, %s34_s22 }
   0xd   :  { %p1252_p3 = scmp.ne.s32.totalorder %s34_s22, %s1251_s8  ;;  %p1257_p5 = scmp.lt.s32.totalorder %s1251_s8, %s1251_s8 }
   0xf   :  { %p1258_p6 = por %p1257_p5, %p1256_p4 }
  0x11   :  { %p1259_p7 = pnand %p1258_p6, %p1252_p3 }
  0x13   :  { %1262 = shalt.err (!%p1259_p7)
}
  0x14   :  { %s1407_s9 = smov 64   ;;  %s1408_s10 = smov 4  }
  0x15   :  { %39 = dma.hbm_to_vmem [thread:$0]  %s1759_s1, 1024, %s34_s22, [#allocation8], %s1407_s9, %s1407_s9, %s1408_s10  }
  0x16   :  { %s1263_s15 = scalar_lea.hbm %s1761_s3, 16 }
  0x17   :  { %p1264_p8 = scmp.ne.s32.totalorder %s1761_s3, %s1263_s15  ;;  %p1267_p9 = scmp.lt.u32.totalorder %s1263_s15, %s1761_s3 }
  0x19   :  { %p1269_p10 = pnand %p1267_p9, %p1264_p8 }
  0x1b   :  { %1272 = shalt.err (!%p1269_p10)
}
  0x1c   :  { %s1273_s20 = scalar_lea.vmem %s1454_s24, 16  ;;  %s1277_s1 = scalar_lea.vmem %s1454_s24, 32 }
  0x1d   :  { %p1274_p11 = scmp.ne.s32.totalorder %s1454_s24, %s1273_s20  ;;  %p1278_p12 = scmp.lt.s32.totalorder %s1454_s24, %s1454_s24 }
  0x1e   :  { %p1279_p13 = scmp.lt.s32.totalorder %s1277_s1, %s1273_s20 }
  0x20   :  { %p1280_p0 = por %p1279_p13, %p1278_p12 }
  0x22   :  { %p1281_p1 = pnand %p1280_p0, %p1274_p11 }
  0x24   :  { %1284 = shalt.err (!%p1281_p1)
}
  0x25   :  { %61 = dma.hbm_to_vmem [thread:$0]  %s1761_s3, 16, %s1454_s24, [#allocation11]  }
  0x26   :  { %s1409_s23 = smov [#allocation4]   ;;  %s1410_s26 = smov [#allocation9]  }
  0x27   :  { %s21_s25 = sshll.u32 %s1409_s23, 4  ;;  %s45_s27 = sshll.u32 %s1410_s26, 4  ;;  %s22_s25 = int_to_ptr.vmem [resolvable:$true] %s21_s25  ;;  %s1489_s27 = int_to_ptr.vmem [resolvable:$true] %s45_s27 }
  0x28   :  { %s1285_s30 = scalar_lea.hbm %s1758_s0, 512 }
  0x29   :  { %p1286_p2 = scmp.ne.s32.totalorder %s1758_s0, %s1285_s30  ;;  %p1289_p3 = scmp.lt.u32.totalorder %s1285_s30, %s1758_s0 }
  0x2b   :  { %p1291_p4 = pnand %p1289_p3, %p1286_p2 }
  0x2d   :  { %1294 = shalt.err (!%p1291_p4)
}
  0x2e   :  { %s1295_s3 = scalar_lea.vmem %s22_s25, 512  ;;  %p1300_p6 = scmp.lt.s32.totalorder %s22_s25, %s22_s25 }
  0x2f   :  { %p1296_p5 = scmp.ne.s32.totalorder %s22_s25, %s1295_s3  ;;  %p1301_p7 = scmp.lt.s32.totalorder %s1295_s3, %s1295_s3 }
  0x31   :  { %p1302_p8 = por %p1301_p7, %p1300_p6 }
  0x33   :  { %p1303_p9 = pnand %p1302_p8, %p1296_p5 }
  0x35   :  { %1306 = shalt.err (!%p1303_p9)
}
  0x36   :  { %27 = dma.hbm_to_vmem [thread:$0]  %s1758_s0, 512, %s22_s25, [#allocation5], %s1407_s9, %s1407_s9, %s1408_s10  }
  0x37   :  { %s1307_s16 = scalar_lea.hbm %s1760_s2, 1024 }
  0x38   :  { %p1308_p10 = scmp.ne.s32.totalorder %s1760_s2, %s1307_s16  ;;  %p1311_p11 = scmp.lt.u32.totalorder %s1307_s16, %s1760_s2 }
  0x3a   :  { %p1313_p12 = pnand %p1311_p11, %p1308_p10 }
  0x3c   :  { %1316 = shalt.err (!%p1313_p12)
}
  0x3d   :  { %s1317_s1 = scalar_lea.vmem %s1489_s27, 1024  ;;  %p1322_p0 = scmp.lt.s32.totalorder %s1489_s27, %s1489_s27 }
  0x3e   :  { %p1318_p13 = scmp.ne.s32.totalorder %s1489_s27, %s1317_s1  ;;  %p1323_p1 = scmp.lt.s32.totalorder %s1317_s1, %s1317_s1 }
  0x40   :  { %p1324_p2 = por %p1323_p1, %p1322_p0 }
  0x42   :  { %p1325_p3 = pnand %p1324_p2, %p1318_p13 }
  0x44   :  { %1328 = shalt.err (!%p1325_p3)
}
  0x45   :  { %51 = dma.hbm_to_vmem [thread:$0]  %s1760_s2, 1024, %s1489_s27, [#allocation8], %s1407_s9, %s1407_s9, %s1408_s10  }
  0x46   :  { %s1411_s22 = smov [#allocation12]   ;;  %s1329_s28 = scalar_lea.hbm %s1762_s4, 2048 }
  0x47   :  { %s67_s23 = sshll.u32 %s1411_s22, 4  ;;  %p1330_p4 = scmp.ne.s32.totalorder %s1762_s4, %s1329_s28  ;;  %s68_s23 = int_to_ptr.vmem [resolvable:$true] %s67_s23 }
  0x48   :  { %p1333_p5 = scmp.lt.u32.totalorder %s1329_s28, %s1762_s4 }
  0x4a   :  { %p1335_p6 = pnand %p1333_p5, %p1330_p4 }
  0x4c   :  { %1338 = shalt.err (!%p1335_p6)
}
  0x4d   :  { %s1339_s11 = scalar_lea.vmem %s68_s23, 2048  ;;  %p1344_p8 = scmp.lt.s32.totalorder %s68_s23, %s68_s23 }
  0x4e   :  { %p1340_p7 = scmp.ne.s32.totalorder %s68_s23, %s1339_s11  ;;  %p1345_p9 = scmp.lt.s32.totalorder %s1339_s11, %s1339_s11 }
  0x50   :  { %p1346_p10 = por %p1345_p9, %p1344_p8 }
  0x52   :  { %p1347_p11 = pnand %p1346_p10, %p1340_p7 }
  0x54   :  { %1350 = shalt.err (!%p1347_p11)
}
  0x55   :  { %s1412_s2 = smov 128   ;;  %s1413_s9 = smov 8  }
  0x56   :  { %73 = dma.hbm_to_vmem [thread:$0]  %s1762_s4, 2048, %s68_s23, [#allocation11], %s1412_s2, %s1412_s2, %s1413_s9  }
  0x57   :  { %s1414_s12 = smov [#allocation13]   ;;  %s1351_s14 = scalar_lea.hbm %s1763_s5, 16 }
  0x58   :  { %s80_s3 = sshll.u32 %s1414_s12, 4  ;;  %p1352_p12 = scmp.ne.s32.totalorder %s1763_s5, %s1351_s14  ;;  %s81_s3 = int_to_ptr.vmem [resolvable:$true] %s80_s3 }
  0x59   :  { %p1355_p13 = scmp.lt.u32.totalorder %s1351_s14, %s1763_s5 }
  0x5b   :  { %p1357_p0 = pnand %p1355_p13, %p1352_p12 }
  0x5d   :  { %1360 = shalt.err (!%p1357_p0)
}
  0x5e   :  { %s1361_s19 = scalar_lea.vmem %s81_s3, 16  ;;  %s1365_s4 = scalar_lea.vmem %s81_s3, 32 }
  0x5f   :  { %p1362_p1 = scmp.ne.s32.totalorder %s81_s3, %s1361_s19  ;;  %p1366_p2 = scmp.lt.s32.totalorder %s81_s3, %s81_s3 }
  0x60   :  { %p1367_p3 = scmp.lt.s32.totalorder %s1365_s4, %s1361_s19 }
  0x62   :  { %p1368_p4 = por %p1367_p3, %p1366_p2 }
  0x64   :  { %p1369_p5 = pnand %p1368_p4, %p1362_p1 }
  0x66   :  { %1372 = shalt.err (!%p1369_p5)
}
  0x67   :  { %83 = dma.hbm_to_vmem [thread:$0]  %s1763_s5, 16, %s81_s3, [#allocation14]  }
  0x68   :  { %1395 = dma.done.wait [#allocation5], 512  }
  0x69   :  { %1396 = vsyncadd [#allocation5], 4294966784 }
  0x6a   :  { %1397 = dma.done.wait [#allocation8], 2048  }
  0x6b   :  { %1398 = vsyncadd [#allocation8], 4294965248 }
  0x6c   :  { %1399 = dma.done.wait [#allocation11], 2064  }
  0x6d   :  { %1400 = vsyncadd [#allocation11], 4294965232 }
  0x6e   :  { %1401 = dma.done.wait [#allocation14], 16  }
  0x6f   :  { %1402 = vsyncadd [#allocation14], 4294967280  ;;  %v1415_v0 = vmov 0.0   ;;  %vm1416_vm0 = vmmov 0   ;;  %v1205_v1 = vld [vmem:[#allocation7] sm:$0xff]   ;;  %v1207_v3 = vld [vmem:[#allocation7 + $0x8] sm:$0xff]  }
  0x70   :  { %972 = vmatprep.subr.bf16.mxu1 %v1415_v0  ;;  %988 = vmatprep.mubr.msk.bf16.mxu1 %vm1416_vm0, %v1415_v0  ;;  %v1553_v2 = vld [vmem:[#allocation9] sm:$0xff]   ;;  %v1556_v4 = vld [vmem:[#allocation9 + $0x8] sm:$0xff]   ;;  %v1209_v5 = vld [vmem:[#allocation7 + $0x10] sm:$0xff]   ;;  %v1417_v19 = vmov 0.0|0.0   ;;  %s1418_s5 = smov [#allocation15]  }
  0x71   :  { %948 = vmatprep.subr.bf16.mxu0 %v1205_v1  ;;  %973 = vmatpush3.bf16.msra.mxu1 %v1553_v2  ;;  %v1560_v6 = vld [vmem:[#allocation9 + $0x10] sm:$0xff]   ;;  %v1211_v7 = vld [vmem:[#allocation7 + $0x18] sm:$0xff]   ;;  %v1213_v9 = vld [vmem:[#allocation7 + $0x20] sm:$0xff]   ;;  %s813_s0 = sshll.u32 %s1418_s5, 4  ;;  %s814_s0 = int_to_ptr.vmem [resolvable:$true] %s813_s0 }
  0x72   :  { %949 = vmatpush3.bf16.msra.mxu0 %v1205_v1  ;;  %974 = vmatprep.subr.bf16.mxu1 %v1415_v0  ;;  %v1564_v8 = vld [vmem:[#allocation9 + $0x18] sm:$0xff]   ;;  %v1567_v10 = vld [vmem:[#allocation9 + $0x20] sm:$0xff]   ;;  %v1215_v11 = vld [vmem:[#allocation7 + $0x28] sm:$0xff]   ;;  %s1373_s21 = scalar_lea.vmem %s814_s0, 128  ;;  %p1378_p7 = scmp.lt.s32.totalorder %s814_s0, %s814_s0 }
  0x73   :  { %950 = vmatprep.subr.bf16.mxu0 %v1207_v3  ;;  %v1221_v12 = vld [vmem:[#allocation4] sm:$0xff]   ;;  %v1572_v13 = vld [vmem:[#allocation9 + $0x28] sm:$0xff]   ;;  %v1217_v14 = vld [vmem:[#allocation7 + $0x30] sm:$0xff]   ;;  %p1374_p6 = scmp.ne.s32.totalorder %s814_s0, %s1373_s21  ;;  %p1379_p8 = scmp.lt.s32.totalorder %s1373_s21, %s1373_s21 }
  0x74   :  { %964 = vmatprep.mubr.bf16.mxu0 %v1221_v12  ;;  %v1576_v15 = vld [vmem:[#allocation9 + $0x30] sm:$0xff]   ;;  %v1219_v16 = vld [vmem:[#allocation7 + $0x38] sm:$0xff]   ;;  %v1222_v18 = vld [vmem:[#allocation4 + $0x8] sm:$0xff]  }
  0x75   :  { %975 = vmatpush3.bf16.msra.mxu1 %v1556_v4  ;;  %v1580_v17 = vld [vmem:[#allocation9 + $0x38] sm:$0xff]   ;;  %v1223_v20 = vld [vmem:[#allocation4 + $0x10] sm:$0xff]   ;;  %v1623_v22 = vld [vmem:[#allocation10] ss:$0 sm:$0xff]  ;;  %p1380_p9 = por %p1379_p8, %p1378_p7 }
  0x76   :  { %951 = vmatpush3.bf16.msra.mxu0 %v1207_v3  ;;  %976 = vmatprep.subr.bf16.mxu1 %v1415_v0  ;;  %v1224_v21 = vld [vmem:[#allocation4 + $0x18] sm:$0xff]  }
  0x77   :  { %952 = vmatprep.subr.bf16.mxu0 %v1209_v5  ;;  %p1381_p10 = pnand %p1380_p9, %p1374_p6 }
  0x79   :  { %977 = vmatpush3.bf16.msra.mxu1 %v1560_v6 }
  0x7a   :  { %953 = vmatpush3.bf16.msra.mxu0 %v1209_v5  ;;  %978 = vmatprep.subr.bf16.mxu1 %v1415_v0 }
  0x7b   :  { %954 = vmatprep.subr.bf16.mxu0 %v1211_v7 }
  0x7d   :  { %979 = vmatpush3.bf16.msra.mxu1 %v1564_v8 }
  0x7e   :  { %955 = vmatpush3.bf16.msra.mxu0 %v1211_v7  ;;  %980 = vmatprep.subr.bf16.mxu1 %v1415_v0 }
  0x7f   :  { %956 = vmatprep.subr.bf16.mxu0 %v1213_v9 }
  0x81   :  { %981 = vmatpush3.bf16.msra.mxu1 %v1567_v10 }
  0x82   :  { %957 = vmatpush3.bf16.msra.mxu0 %v1213_v9  ;;  %982 = vmatprep.subr.bf16.mxu1 %v1415_v0 }
  0x83   :  { %958 = vmatprep.subr.bf16.mxu0 %v1215_v11 }
  0x85   :  { %983 = vmatpush3.bf16.msra.mxu1 %v1572_v13 }
  0x86   :  { %959 = vmatpush3.bf16.msra.mxu0 %v1215_v11  ;;  %984 = vmatprep.subr.bf16.mxu1 %v1415_v0 }
  0x87   :  { %960 = vmatprep.subr.bf16.mxu0 %v1217_v14 }
  0x89   :  { %985 = vmatpush3.bf16.msra.mxu1 %v1576_v15 }
  0x8a   :  { %961 = vmatpush3.bf16.msra.mxu0 %v1217_v14  ;;  %986 = vmatprep.subr.bf16.mxu1 %v1415_v0 }
  0x8b   :  { %962 = vmatprep.subr.bf16.mxu0 %v1219_v16 }
  0x8d   :  { %987 = vmatpush3.bf16.msra.mxu1 %v1580_v17 }
  0x8e   :  { %963 = vmatpush3.bf16.msra.mxu0 %v1219_v16  ;;  %1012 = vmatprep.subr.bf16.mxu1 %v1415_v0 }
  0x8f   :  { %992 = vmatprep.subr.bf16.mxu0 %v1415_v0 }
  0x90   :  { %989 = vmatmul.mubr.bf16.vlgmr.msra.gmra.mrb[0].mxu1 %v1417_v19 }
  0x91   :  { %965 = vmatmul.mubr.bf16.vlgmr.msra.gmra.mrb[0].mxu0 %v1222_v18  ;;  %1013 = vmatpush3.bf16.msra.mxu1 %v1553_v2 }
  0x92   :  { %993 = vmatpush3.bf16.msra.mxu0 %v1553_v2  ;;  %1014 = vmatprep.subr.bf16.mxu1 %v1415_v0 }
  0x93   :  { %994 = vmatprep.subr.bf16.mxu0 %v1415_v0  ;;  %1028 = vmatprep.mubr.msk.bf16.mxu1 %vm1416_vm0, %v1415_v0 }
  0x94   :  { %968 = vmatprep.mubr.bf16.mxu0 %v1223_v20  ;;  %v715_v20 = vld [vmem:[#allocation12 + $0x10] sm:$0xff] }
  0x95   :  { %1015 = vmatpush3.bf16.msra.mxu1 %v1556_v4 }
  0x96   :  { %995 = vmatpush3.bf16.msra.mxu0 %v1556_v4  ;;  %1016 = vmatprep.subr.bf16.mxu1 %v1415_v0 }
  0x97   :  { %996 = vmatprep.subr.bf16.mxu0 %v1415_v0 }
  0x99   :  { %1017 = vmatpush3.bf16.msra.mxu1 %v1560_v6  ;;  %969 = vmatmul.mubr.bf16.gmra.mrb[4].mxu0 %v1224_v21 }
  0x9a   :  { %997 = vmatpush3.bf16.msra.mxu0 %v1560_v6  ;;  %1018 = vmatprep.subr.bf16.mxu1 %v1415_v0 }
  0x9b   :  { %998 = vmatprep.subr.bf16.mxu0 %v1415_v0  ;;  %1008 = vmatprep.mubr.msk.bf16.mxu0 %vm1416_vm0, %v1415_v0 }
  0x9d   :  { %1019 = vmatpush3.bf16.msra.mxu1 %v1564_v8 }
  0x9e   :  { %999 = vmatpush3.bf16.msra.mxu0 %v1564_v8  ;;  %1020 = vmatprep.subr.bf16.mxu1 %v1415_v0 }
  0x9f   :  { %1000 = vmatprep.subr.bf16.mxu0 %v1415_v0 }
  0xa1   :  { %1021 = vmatpush3.bf16.msra.mxu1 %v1567_v10 }
  0xa2   :  { %1001 = vmatpush3.bf16.msra.mxu0 %v1567_v10  ;;  %1022 = vmatprep.subr.bf16.mxu1 %v1415_v0 }
  0xa3   :  { %1002 = vmatprep.subr.bf16.mxu0 %v1415_v0 }
  0xa5   :  { %1023 = vmatpush3.bf16.msra.mxu1 %v1572_v13 }
  0xa6   :  { %1003 = vmatpush3.bf16.msra.mxu0 %v1572_v13  ;;  %1024 = vmatprep.subr.bf16.mxu1 %v1415_v0 }
  0xa7   :  { %1004 = vmatprep.subr.bf16.mxu0 %v1415_v0 }
  0xa9   :  { %1025 = vmatpush3.bf16.msra.mxu1 %v1576_v15 }
  0xaa   :  { %1005 = vmatpush3.bf16.msra.mxu0 %v1576_v15  ;;  %1026 = vmatprep.subr.bf16.mxu1 %v1415_v0 }
  0xab   :  { %1006 = vmatprep.subr.bf16.mxu0 %v1415_v0 }
  0xad   :  { %1027 = vmatpush3.bf16.msra.mxu1 %v1580_v17 }
  0xae   :  { %1007 = vmatpush3.bf16.msra.mxu0 %v1580_v17  ;;  %1052 = vmatprep.subr.bf16.mxu1 %v1415_v0 }
  0xaf   :  { %1032 = vmatprep.subr.bf16.mxu0 %v1415_v0 }
 0x163   :  { %v385_v24 = vpop.f32.mrb[0].mxu1 }
 0x164   :  { %v966_v23 = vpop.f32.mrb[0].mxu0  ;;  %v990_v26 = vpop.f32.mrb[1].mxu1 }
 0x165   :  { %v245_v25 = vpop.f32.mrb[1].mxu0  ;;  %v388_v29 = vpop.f32.mrb[2].mxu1  ;;  %v254_v47 = vadd.f32 %v966_v23, %v1623_v22 }
 0x166   :  { %v246_v27 = vadd.f32 %v1623_v22, %v245_v25  ;;  %v1626_v28 = vpop.f32.mrb[2].mxu0  ;;  %v991_v31 = vpop.f32.mrb[3].mxu1  ;;  %v718_v25 = vld [vmem:[#allocation12 + $0x28] sm:$0xff] }
 0x167   :  { %v248_v30 = vpop.f32.mrb[3].mxu0  ;;  %v257_v55 = vadd.f32 %v1626_v28, %v1623_v22  ;;  %v720_v28 = vld [vmem:[#allocation12 + $0x38] sm:$0xff] }
 0x168   :  { %v391_v32 = vadd.f32 %v385_v24, %v246_v27  ;;  %v249_v39 = vadd.f32 %v1623_v22, %v248_v30  ;;  %v717_v24 = vld [vmem:[#allocation12 + $0x20] sm:$0xff]  ;;  %v719_v27 = vld [vmem:[#allocation12 + $0x30] sm:$0xff]  ;;  %v722_v30 = vld [vmem:[#allocation12 + $0x48] sm:$0xff] }
 0x169   :  { %v1174_v26 = vpack.c.bf16 %v718_v25, %v717_v24  ;;  %v1177_v29 = vpack.c.bf16 %v720_v28, %v719_v27 }
 0x16a   :  { %1225 = vtanh.f32 %v391_v32 }
 0x16c   :  { %v1646_v35 = vpop.f32.mrb[4].mxu0 }
 0x16d   :  { %v1648_v36 = vpop.f32.mrb[5].mxu0  ;;  %v270_v32 = vadd.f32 %v1646_v35, %v1623_v22  ;;  %v728_v35 = vld [vmem:[#allocation12 + $0x78] sm:$0xff] }
 0x16e   :  { %v1650_v37 = vpop.f32.mrb[6].mxu0  ;;  %v262_v63 = vadd.f32 %v1623_v22, %v1648_v36 }
 0x16f   :  { %v1652_v38 = vpop.f32.mrb[7].mxu0 }
 0x174   :  { %v1226_v33 = vpop.eup %1225 }
 0x175   :  { %v395_v34 = vpack.c.bf16 %v1226_v33, %v1226_v33 }
 0x177   :  { %1009 = vmatmul.mubr.bf16.vlgmr.msra.gmra.mrb[8].mxu0 %v395_v34 }
 0x178   :  { %1033 = vmatpush3.bf16.msra.mxu0 %v1553_v2  ;;  %1048 = vmatprep.mubr.msk.bf16.mxu0 %vm1416_vm0, %v1415_v0 }
 0x179   :  { %1034 = vmatprep.subr.bf16.mxu0 %v1415_v0 }
 0x17c   :  { %1035 = vmatpush3.bf16.msra.mxu0 %v1556_v4 }
 0x17d   :  { %1036 = vmatprep.subr.bf16.mxu0 %v1415_v0 }
 0x180   :  { %1037 = vmatpush3.bf16.msra.mxu0 %v1560_v6 }
 0x181   :  { %1038 = vmatprep.subr.bf16.mxu0 %v1415_v0 }
 0x184   :  { %1039 = vmatpush3.bf16.msra.mxu0 %v1564_v8 }
 0x185   :  { %1040 = vmatprep.subr.bf16.mxu0 %v1415_v0 }
 0x188   :  { %1041 = vmatpush3.bf16.msra.mxu0 %v1567_v10 }
 0x189   :  { %1042 = vmatprep.subr.bf16.mxu0 %v1415_v0 }
 0x18c   :  { %1043 = vmatpush3.bf16.msra.mxu0 %v1572_v13 }
 0x18d   :  { %1044 = vmatprep.subr.bf16.mxu0 %v1415_v0 }
 0x190   :  { %1045 = vmatpush3.bf16.msra.mxu0 %v1576_v15 }
 0x191   :  { %1046 = vmatprep.subr.bf16.mxu0 %v1415_v0 }
 0x194   :  { %1047 = vmatpush3.bf16.msra.mxu0 %v1580_v17 }
 0x195   :  { %1072 = vmatprep.subr.bf16.mxu0 %v1415_v0 }
 0x24a   :  { %v430_v40 = vpop.f32.mrb[8].mxu0 }
 0x24b   :  { %v436_v41 = vadd.f32 %v430_v40, %v249_v39  ;;  %v1010_v42 = vpop.f32.mrb[9].mxu0 }
 0x24c   :  { %v433_v43 = vpop.f32.mrb[10].mxu0  ;;  %v723_v42 = vld [vmem:[#allocation12 + $0x50] sm:$0xff] }
 0x24d   :  { %1227 = vtanh.f32 %v436_v41  ;;  %v1011_v44 = vpop.f32.mrb[11].mxu0  ;;  %v724_v43 = vld [vmem:[#allocation12 + $0x58] sm:$0xff] }
 0x24e   :  { %v1183_v44 = vpack.c.bf16 %v724_v43, %v723_v42 }
 0x257   :  { %v1228_v45 = vpop.eup %1227 }
 0x258   :  { %v440_v46 = vpack.c.bf16 %v1228_v45, %v1228_v45  ;;  %v725_v45 = vld [vmem:[#allocation12 + $0x60] sm:$0xff] }
 0x25a   :  { %1029 = vmatmul.mubr.bf16.vlgmr.msra.gmra.mrb[4].mxu1 %v440_v46  ;;  %v726_v46 = vld [vmem:[#allocation12 + $0x68] sm:$0xff] }
 0x25b   :  { %1053 = vmatpush3.bf16.msra.mxu1 %v1553_v2  ;;  %1068 = vmatprep.mubr.msk.bf16.mxu1 %vm1416_vm0, %v1415_v0 }
 0x25c   :  { %1054 = vmatprep.subr.bf16.mxu1 %v1415_v0 }
 0x25f   :  { %1055 = vmatpush3.bf16.msra.mxu1 %v1556_v4 }
 0x260   :  { %1056 = vmatprep.subr.bf16.mxu1 %v1415_v0 }
 0x263   :  { %1057 = vmatpush3.bf16.msra.mxu1 %v1560_v6 }
 0x264   :  { %1058 = vmatprep.subr.bf16.mxu1 %v1415_v0 }
 0x267   :  { %1059 = vmatpush3.bf16.msra.mxu1 %v1564_v8 }
 0x268   :  { %1060 = vmatprep.subr.bf16.mxu1 %v1415_v0 }
 0x26b   :  { %1061 = vmatpush3.bf16.msra.mxu1 %v1567_v10 }
 0x26c   :  { %1062 = vmatprep.subr.bf16.mxu1 %v1415_v0 }
 0x26f   :  { %1063 = vmatpush3.bf16.msra.mxu1 %v1572_v13 }
 0x270   :  { %1064 = vmatprep.subr.bf16.mxu1 %v1415_v0 }
 0x273   :  { %1065 = vmatpush3.bf16.msra.mxu1 %v1576_v15 }
 0x274   :  { %1066 = vmatprep.subr.bf16.mxu1 %v1415_v0 }
 0x277   :  { %1067 = vmatpush3.bf16.msra.mxu1 %v1580_v17 }
 0x278   :  { %1092 = vmatprep.subr.bf16.mxu1 %v1415_v0 }
 0x32d   :  { %v475_v48 = vpop.f32.mrb[4].mxu1 }
 0x32e   :  { %v481_v49 = vadd.f32 %v475_v48, %v254_v47  ;;  %v1030_v50 = vpop.f32.mrb[5].mxu1  ;;  %v1186_v47 = vpack.c.bf16 %v726_v46, %v725_v45  ;;  %v727_v48 = vld [vmem:[#allocation12 + $0x70] sm:$0xff] }
 0x32f   :  { %v478_v51 = vpop.f32.mrb[6].mxu1  ;;  %v273_v50 = vadd.f32 %v1650_v37, %v1623_v22 }
 0x330   :  { %1229 = vtanh.f32 %v481_v49  ;;  %v1031_v52 = vpop.f32.mrb[7].mxu1  ;;  %v1189_v49 = vpack.c.bf16 %v728_v35, %v727_v48 }
 0x33a   :  { %v1230_v53 = vpop.eup %1229 }
 0x33b   :  { %v485_v54 = vpack.c.bf16 %v1230_v53, %v1230_v53 }
 0x33d   :  { %1049 = vmatmul.mubr.bf16.vlgmr.msra.gmra.mrb[12].mxu0 %v485_v54 }
 0x33e   :  { %1073 = vmatpush3.bf16.msra.mxu0 %v1553_v2  ;;  %1088 = vmatprep.mubr.msk.bf16.mxu0 %vm1416_vm0, %v1415_v0 }
 0x33f   :  { %1074 = vmatprep.subr.bf16.mxu0 %v1415_v0 }
 0x342   :  { %1075 = vmatpush3.bf16.msra.mxu0 %v1556_v4 }
 0x343   :  { %1076 = vmatprep.subr.bf16.mxu0 %v1415_v0 }
 0x346   :  { %1077 = vmatpush3.bf16.msra.mxu0 %v1560_v6 }
 0x347   :  { %1078 = vmatprep.subr.bf16.mxu0 %v1415_v0 }
 0x34a   :  { %1079 = vmatpush3.bf16.msra.mxu0 %v1564_v8 }
 0x34b   :  { %1080 = vmatprep.subr.bf16.mxu0 %v1415_v0 }
 0x34e   :  { %1081 = vmatpush3.bf16.msra.mxu0 %v1567_v10 }
 0x34f   :  { %1082 = vmatprep.subr.bf16.mxu0 %v1415_v0 }
 0x352   :  { %1083 = vmatpush3.bf16.msra.mxu0 %v1572_v13 }
 0x353   :  { %1084 = vmatprep.subr.bf16.mxu0 %v1415_v0 }
 0x356   :  { %1085 = vmatpush3.bf16.msra.mxu0 %v1576_v15 }
 0x357   :  { %1086 = vmatprep.subr.bf16.mxu0 %v1415_v0 }
 0x35a   :  { %1087 = vmatpush3.bf16.msra.mxu0 %v1580_v17 }
 0x35b   :  { %1112 = vmatprep.subr.bf16.mxu0 %v1415_v0 }
 0x410   :  { %v520_v56 = vpop.f32.mrb[12].mxu0 }
 0x411   :  { %v526_v57 = vadd.f32 %v520_v56, %v257_v55  ;;  %v1050_v58 = vpop.f32.mrb[13].mxu0 }
 0x412   :  { %v523_v59 = vpop.f32.mrb[14].mxu0 }
 0x413   :  { %1231 = vtanh.f32 %v526_v57  ;;  %v1051_v60 = vpop.f32.mrb[15].mxu0  ;;  %v846_v57 = vld [vmem:[#allocation13] ss:$0 sm:$0xff] }
 0x41d   :  { %v1232_v61 = vpop.eup %1231 }
 0x41e   :  { %v530_v62 = vpack.c.bf16 %v1232_v61, %v1232_v61 }
 0x420   :  { %1069 = vmatmul.mubr.bf16.vlgmr.msra.gmra.mrb[8].mxu1 %v530_v62 }
 0x421   :  { %1093 = vmatpush3.bf16.msra.mxu1 %v1553_v2  ;;  %1108 = vmatprep.mubr.msk.bf16.mxu1 %vm1416_vm0, %v1415_v0 }
 0x422   :  { %1094 = vmatprep.subr.bf16.mxu1 %v1415_v0 }
 0x425   :  { %1095 = vmatpush3.bf16.msra.mxu1 %v1556_v4 }
 0x426   :  { %1096 = vmatprep.subr.bf16.mxu1 %v1415_v0 }
 0x429   :  { %1097 = vmatpush3.bf16.msra.mxu1 %v1560_v6 }
 0x42a   :  { %1098 = vmatprep.subr.bf16.mxu1 %v1415_v0 }
 0x42d   :  { %1099 = vmatpush3.bf16.msra.mxu1 %v1564_v8 }
 0x42e   :  { %1100 = vmatprep.subr.bf16.mxu1 %v1415_v0 }
 0x431   :  { %1101 = vmatpush3.bf16.msra.mxu1 %v1567_v10 }
 0x432   :  { %1102 = vmatprep.subr.bf16.mxu1 %v1415_v0 }
 0x435   :  { %1103 = vmatpush3.bf16.msra.mxu1 %v1572_v13 }
 0x436   :  { %1104 = vmatprep.subr.bf16.mxu1 %v1415_v0 }
 0x439   :  { %1105 = vmatpush3.bf16.msra.mxu1 %v1576_v15 }
 0x43a   :  { %1106 = vmatprep.subr.bf16.mxu1 %v1415_v0 }
 0x43d   :  { %1107 = vmatpush3.bf16.msra.mxu1 %v1580_v17 }
 0x43e   :  { %1167 = vmatprep.subr.bf16.mxu1 %v1417_v19 }
 0x4f3   :  { %v565_v1 = vpop.f32.mrb[8].mxu1 }
 0x4f4   :  { %v571_v3 = vadd.f32 %v565_v1, %v262_v63  ;;  %v1070_v5 = vpop.f32.mrb[9].mxu1 }
 0x4f5   :  { %v568_v7 = vpop.f32.mrb[10].mxu1 }
 0x4f6   :  { %1233 = vtanh.f32 %v571_v3  ;;  %v1071_v9 = vpop.f32.mrb[11].mxu1 }
 0x500   :  { %v1234_v11 = vpop.eup %1233 }
 0x501   :  { %v575_v12 = vpack.c.bf16 %v1234_v11, %v1234_v11 }
 0x503   :  { %1089 = vmatmul.mubr.bf16.vlgmr.msra.gmra.mrb[16].mxu0 %v575_v12 }
 0x504   :  { %1113 = vmatpush3.bf16.msra.mxu0 %v1553_v2  ;;  %1128 = vmatprep.mubr.msk.bf16.mxu0 %vm1416_vm0, %v1415_v0  ;;  %v265_v2 = vadd.f32 %v1623_v22, %v1652_v38 }
 0x505   :  { %1114 = vmatprep.subr.bf16.mxu0 %v1415_v0 }
 0x508   :  { %1115 = vmatpush3.bf16.msra.mxu0 %v1556_v4 }
 0x509   :  { %1116 = vmatprep.subr.bf16.mxu0 %v1415_v0 }
 0x50c   :  { %1117 = vmatpush3.bf16.msra.mxu0 %v1560_v6 }
 0x50d   :  { %1118 = vmatprep.subr.bf16.mxu0 %v1415_v0 }
 0x510   :  { %1119 = vmatpush3.bf16.msra.mxu0 %v1564_v8 }
 0x511   :  { %1120 = vmatprep.subr.bf16.mxu0 %v1415_v0 }
 0x514   :  { %1121 = vmatpush3.bf16.msra.mxu0 %v1567_v10 }
 0x515   :  { %1122 = vmatprep.subr.bf16.mxu0 %v1415_v0 }
 0x518   :  { %1123 = vmatpush3.bf16.msra.mxu0 %v1572_v13  ;;  %v713_v13 = vld [vmem:[#allocation12] sm:$0xff] }
 0x519   :  { %1124 = vmatprep.subr.bf16.mxu0 %v1415_v0 }
 0x51c   :  { %1125 = vmatpush3.bf16.msra.mxu0 %v1576_v15  ;;  %v714_v15 = vld [vmem:[#allocation12 + $0x8] sm:$0xff] }
 0x51d   :  { %1126 = vmatprep.subr.bf16.mxu0 %v1415_v0  ;;  %v1168_v21 = vpack.c.bf16 %v714_v15, %v713_v13 }
 0x520   :  { %1127 = vmatpush3.bf16.msra.mxu0 %v1580_v17  ;;  %v716_v17 = vld [vmem:[#allocation12 + $0x18] sm:$0xff] }
 0x521   :  { %v1171_v23 = vpack.c.bf16 %v716_v17, %v715_v20 }
 0x5d6   :  { %v610_v4 = vpop.f32.mrb[16].mxu0 }
 0x5d7   :  { %v616_v6 = vadd.f32 %v610_v4, %v265_v2  ;;  %v1090_v8 = vpop.f32.mrb[17].mxu0 }
 0x5d8   :  { %v613_v14 = vpop.f32.mrb[18].mxu0 }
 0x5d9   :  { %1235 = vtanh.f32 %v616_v6  ;;  %v1091_v10 = vpop.f32.mrb[19].mxu0 }
 0x5e3   :  { %v1236_v16 = vpop.eup %1235 }
 0x5e4   :  { %v620_v18 = vpack.c.bf16 %v1236_v16, %v1236_v16 }
 0x5e6   :  { %1109 = vmatmul.mubr.bf16.vlgmr.msra.gmra.mrb[12].mxu1 %v620_v18 }
 0x5e7   :  { %1164 = vmatprep.mubr.msk.f32.mxu1 %vm1416_vm0, %v1415_v0  ;;  %1169 = vmatpush3.bf16.msra.mxu1 %v1168_v21  ;;  %v721_v0 = vld [vmem:[#allocation12 + $0x40] sm:$0xff] }
 0x5e8   :  { %1170 = vmatprep.subr.bf16.mxu1 %v1417_v19  ;;  %v1180_v31 = vpack.c.bf16 %v722_v30, %v721_v0 }
 0x5eb   :  { %1172 = vmatpush3.bf16.msra.mxu1 %v1171_v23 }
 0x5ec   :  { %1173 = vmatprep.subr.bf16.mxu1 %v1417_v19 }
 0x5ef   :  { %1175 = vmatpush3.bf16.msra.mxu1 %v1174_v26 }
 0x5f0   :  { %1176 = vmatprep.subr.bf16.mxu1 %v1417_v19 }
 0x5f3   :  { %1178 = vmatpush3.bf16.msra.mxu1 %v1177_v29 }
 0x5f4   :  { %1179 = vmatprep.subr.bf16.mxu1 %v1417_v19 }
 0x5f7   :  { %1181 = vmatpush3.bf16.msra.mxu1 %v1180_v31 }
 0x5f8   :  { %1182 = vmatprep.subr.bf16.mxu1 %v1417_v19 }
 0x5fb   :  { %1184 = vmatpush3.bf16.msra.mxu1 %v1183_v44 }
 0x5fc   :  { %1185 = vmatprep.subr.bf16.mxu1 %v1417_v19 }
 0x5ff   :  { %1187 = vmatpush3.bf16.msra.mxu1 %v1186_v47 }
 0x600   :  { %1188 = vmatprep.subr.bf16.mxu1 %v1417_v19 }
 0x603   :  { %1190 = vmatpush3.bf16.msra.mxu1 %v1189_v49 }
 0x6b9   :  { %v655_v33 = vpop.f32.mrb[12].mxu1 }
 0x6ba   :  { %v661_v34 = vadd.f32 %v655_v33, %v270_v32  ;;  %v1110_v36 = vpop.f32.mrb[13].mxu1 }
 0x6bb   :  { %v658_v38 = vpop.f32.mrb[14].mxu1 }
 0x6bc   :  { %1237 = vtanh.f32 %v661_v34  ;;  %v1111_v39 = vpop.f32.mrb[15].mxu1 }
 0x6c6   :  { %v1238_v40 = vpop.eup %1237 }
 0x6c7   :  { %v665_v41 = vpack.c.bf16 %v1238_v40, %v1238_v40 }
 0x6c9   :  { %1129 = vmatmul.mubr.bf16.vlgmr.msra.gmra.mrb[20].mxu0 %v665_v41 }
 0x79c   :  { %v700_v51 = vpop.f32.mrb[20].mxu0 }
 0x79d   :  { %v706_v52 = vadd.f32 %v700_v51, %v273_v50  ;;  %v1130_v53 = vpop.f32.mrb[21].mxu0 }
 0x79e   :  { %v703_v54 = vpop.f32.mrb[22].mxu0 }
 0x79f   :  { %1239 = vtanh.f32 %v706_v52  ;;  %v1131_v55 = vpop.f32.mrb[23].mxu0 }
 0x7a9   :  { %v1240_v56 = vpop.eup %1239 }
 0x7aa   :  { %1165 = vmatmul.mubr.f32.vlgmr.msra.gmra.mrb[16].mxu1 %v1240_v56 }
 0x87d   :  { %v802_v58 = vpop.f32.mrb[16].mxu1 }
 0x87e   :  { %v803_v59 = vadd.f32 %v846_v57, %v802_v58  ;;  %v1166_v60 = vpop.f32.mrb[17].mxu1 }
 0x880   :  { %806 = vst [vmem:[#allocation15] sm:$0xff] %v803_v59 }
 0x881   :  { %1384 = shalt.err (!%p1381_p10)
}
 0x882   :  { %s1385_s25 = scalar_lea.hbm %s1764_s6, 128 }
 0x883   :  { %p1386_p11 = scmp.ne.s32.totalorder %s1764_s6, %s1385_s25  ;;  %p1389_p12 = scmp.lt.u32.totalorder %s1385_s25, %s1764_s6 }
 0x885   :  { %p1391_p13 = pnand %p1389_p12, %p1386_p11 }
 0x887   :  { %1394 = shalt.err (!%p1391_p13)
}
 0x888   :  { %816 = dma.vmem_to_hbm [thread:$0]  %s814_s0, 128, %s1764_s6, [#allocation6]  }
 0x889   :  { %1403 = dma.done.wait [#allocation6], 128  }
 0x88a   :  { %1404 = vsyncadd [#allocation6], 4294967168 }
 0x88b   :  { %820 = vsyncpa [#allocation5], 1 }
 0x88c   :  { %821 = vsyncpa [#allocation8], 1 }
 0x88d   :  { %822 = vsyncpa [#allocation11], 1 }
 0x88e   :  { %823 = vsyncpa [#allocation14], 1 }
 0x88f   :  { %824 = vsyncpa [#allocation6], 1 }

</bundles_post_ra>
